<compile_context>
chip_gen: v6e
topology: v6e:2x2x1
jax: 0.10.0
libtpu: 0.0.40
codegen_flags: <defaults>
</compile_context>

<pallas_src>
import functools

import jax
import jax.numpy as jnp
from jax.experimental import pallas as pl
from jax.experimental.pallas import tpu as pltpu

_LANE = 128


def _dice_kernel(logits_ref, tgt_ref, dice_ref,
                 inter_ref, psum_ref, tsum_ref,
                 *, smooth, num_classes, tile_s, hw, ragged):
    """One (batch-group, spatial-tile) grid step.

    logits_ref: (bt, C, tile_s, 128)  native dtype
    tgt_ref:    (bt, tile_s, 128)     int8 / int32
    dice_ref:   (bt, C, 1)            f32, written on the last spatial step
    scratch:    three (bt, C, 128) f32 lane-partial accumulators
    """
    k = pl.program_id(1)
    n_k = pl.num_programs(1)

    @pl.when(k == 0)
    def _init():
        inter_ref[...] = jnp.zeros_like(inter_ref)
        psum_ref[...] = jnp.zeros_like(psum_ref)
        tsum_ref[...] = jnp.zeros_like(tsum_ref)

    x = logits_ref[...].astype(jnp.float32)        # (bt, C, TS, 128)
    t = tgt_ref[...].astype(jnp.int32)             # (bt, TS, 128)

    # Channel softmax: reductions over axis=1 are elementwise across the C
    # (TS, 128) slabs -> pure VPU; the reciprocal rides the EUP slot.
    m = jnp.max(x, axis=1, keepdims=True)          # (bt, 1, TS, 128)
    e = jnp.exp(x - m)
    denom = jnp.sum(e, axis=1, keepdims=True)
    probs = e * pl.reciprocal(denom, approx=True)  # (bt, C, TS, 128)

    def _accumulate(valid):
        # valid: (1, TS, 128) bool (True for real pixels) or None (all valid).
        # Small unrolled class loop: compare + select, no iota / one-hot
        # materialization, no int->float converts on the big block.
        for c in range(num_classes):
            p_c = probs[:, c]                      # (bt, TS, 128)
            m_c = t == c                           # (bt, TS, 128) bool
            if valid is not None:
                m_c = jnp.logical_and(m_c, valid)
                p_all = jnp.where(valid, p_c, 0.0)
            else:
                p_all = p_c
            inter_ref[:, c:c + 1, :] += jnp.sum(jnp.where(m_c, p_c, 0.0),
                                                axis=1, keepdims=True)
            psum_ref[:, c:c + 1, :] += jnp.sum(p_all, axis=1, keepdims=True)
            tsum_ref[:, c:c + 1, :] += jnp.sum(jnp.where(m_c, 1.0, 0.0),
                                               axis=1, keepdims=True)

    if ragged:
        # Only the final spatial tile contains out-of-range pixels (lane pad
        # and/or a partial block); every earlier step skips the mask work.
        @pl.when(k < n_k - 1)
        def _bulk():
            _accumulate(None)

        @pl.when(k == n_k - 1)
        def _tail():
            sub = jax.lax.broadcasted_iota(jnp.int32, (1, tile_s, _LANE), 1)
            lane = jax.lax.broadcasted_iota(jnp.int32, (1, tile_s, _LANE), 2)
            pix = (k * tile_s + sub) * _LANE + lane
            _accumulate(pix < hw)
    else:
        _accumulate(None)

    @pl.when(k == n_k - 1)
    def _finalize():
        inter = jnp.sum(inter_ref[...], axis=-1, keepdims=True)   # (bt, C, 1)
        psum = jnp.sum(psum_ref[...], axis=-1, keepdims=True)
        tsum = jnp.sum(tsum_ref[...], axis=-1, keepdims=True)
        dice_ref[...] = (2.0 * inter + smooth) / (psum + tsum + smooth)


def _vmem_limit_bytes():
    phys = 64 * 1024 * 1024                # conservative default (v7x per-core)
    try:
        phys = int(pltpu.get_tpu_info().vmem_capacity_bytes)
    except Exception:
        pass
    # Explicit scoped-VMEM limit with headroom below physical:
    #   v5e/v6e (128 MiB) -> 96 MiB, v7x (64 MiB) -> 48 MiB.
    return int(min(phys * 3 // 4, 96 * 1024 * 1024))


def dice_loss(logits, targets, smooth=1e-5, *,
              tile_s_override=None, bt_override=None):
    """logits: (B, C, H, W) float (any dtype), targets: (B, H, W) int. Scalar loss."""
    B, C, H, W = logits.shape
    HW = H * W
    S = pl.cdiv(HW, _LANE)
    hw_pad = S * _LANE

    # 1 byte/pixel targets when possible (kernel is HBM-BW bound); keep int32
    # for tiny images where the int8 (32,128) sublane tiling does not pay off.
    tgt_dtype = jnp.int8 if (C <= 127 and S >= 32) else jnp.int32

    logits_f = logits.reshape(B, C, HW)
    tgt_f = targets.reshape(B, HW).astype(tgt_dtype)
    if hw_pad != HW:
        # TODO(synk): for large images with H*W % 128 != 0 this jnp.pad copies
        # the whole logits tensor for <128 px of padding; a bulk/tail split
        # would avoid it. No padding beyond the 128-lane row is ever added:
        # partial spatial tiles are masked inside the kernel instead.
        logits_f = jnp.pad(logits_f, ((0, 0), (0, 0), (0, hw_pad - HW)))
        tgt_f = jnp.pad(tgt_f, ((0, 0), (0, hw_pad - HW)))
    logits_r = logits_f.reshape(B, C, S, _LANE)
    tgt_r = tgt_f.reshape(B, S, _LANE)

    vmem_limit = _vmem_limit_bytes()
    budget = (vmem_limit * 3) // 4
    l_item = logits_r.dtype.itemsize
    t_item = jnp.dtype(tgt_dtype).itemsize

    def vmem_est(bt, ts):
        elems = bt * C * ts * _LANE
        in_bytes = elems * l_item + bt * ts * _LANE * t_item
        # 2x inputs (double buffering) + ~4x block size in f32 softmax temps.
        return 2 * in_bytes + 4 * elems * 4 + (1 << 20)

    # Keep >= 2 batch-grid points when B >= 2 so both v7x TensorCores get work.
    # TODO(synk): B == 1 leaves one v7x core idle; an outer parallel spatial
    # axis with wrapper-side combine of the partial sums would fix that.
    max_bt = B if B < 2 else max(1, B // 2)

    if tile_s_override is not None:                 # test/debug hook
        tile_s = int(tile_s_override)
        bt = int(bt_override) if bt_override is not None else 1
    elif vmem_est(1, S) <= budget:
        # Whole image per step; fold batch elements to amortize step overhead.
        tile_s = S
        bt = 1
        for cand in range(max_bt, 0, -1):
            if B % cand == 0 and vmem_est(cand, S) <= budget:
                bt = cand
                break
    else:
        # Large image: big spatial tiles, reduction axis last in the grid.
        tile_s = 32
        for cand in (2048, 1024, 512, 256, 128, 64, 32):
            if cand <= S and vmem_est(1, cand) <= budget:
                tile_s = cand
                break
        bt = 1
    assert B % bt == 0

    n_spatial = pl.cdiv(S, tile_s)
    # Does the last tile contain out-of-range pixels (lane pad / partial block)?
    ragged = (n_spatial * tile_s * _LANE) != HW

    kernel = functools.partial(
        _dice_kernel, smooth=float(smooth), num_classes=C,
        tile_s=tile_s, hw=HW, ragged=ragged)

    dice = pl.pallas_call(
        kernel,
        out_shape=jax.ShapeDtypeStruct((B, C, 1), jnp.float32),
        grid_spec=pltpu.PrefetchScalarGridSpec(
            num_scalar_prefetch=0,
            grid=(B // bt, n_spatial),              # reduction axis last
            in_specs=[
                pl.BlockSpec((bt, C, tile_s, _LANE), lambda b, k: (b, 0, k, 0)),
                pl.BlockSpec((bt, tile_s, _LANE), lambda b, k: (b, k, 0)),
            ],
            out_specs=pl.BlockSpec((bt, C, 1), lambda b, k: (b, 0, 0)),
            scratch_shapes=[
                pltpu.VMEM((bt, C, _LANE), jnp.float32),   # intersection partials
                pltpu.VMEM((bt, C, _LANE), jnp.float32),   # pred-sum partials
                pltpu.VMEM((bt, C, _LANE), jnp.float32),   # target-count partials
            ],
        ),
        compiler_params=pltpu.CompilerParams(
            dimension_semantics=("parallel", "arbitrary"),
            vmem_limit_bytes=vmem_limit,
        ),
    )(logits_r, tgt_r)

    # mean_c (1 - mean_b dice[b, c]) == 1 - mean_{b,c} dice (uniform counts).
    return 1.0 - jnp.mean(dice)


def _dice_loss_ref(logits, targets, smooth=1e-5):
    """Pure-JAX reference mirroring the PyTorch module."""
    B, C, H, W = logits.shape
    probs = jax.nn.softmax(logits.astype(jnp.float32), axis=1)
    onehot = jax.nn.one_hot(targets, C, dtype=jnp.float32)          # (B,H,W,C)
    onehot = jnp.transpose(onehot, (0, 3, 1, 2))                    # (B,C,H,W)
    inter = jnp.sum(probs * onehot, axis=(2, 3))                    # (B,C)
    union = jnp.sum(probs, axis=(2, 3)) + jnp.sum(onehot, axis=(2, 3))
    dice = (2.0 * inter + smooth) / (union + smooth)                # (B,C)
    return jnp.mean(1.0 - jnp.mean(dice, axis=0))


if __name__ == "__main__":
    key = jax.random.PRNGKey(0)
    ks = jax.random.split(key, 6)

    # 1) module spec shape: single-step path, f32 logits, int32 targets.
    B, C, H, W = 2, 4, 16, 16
    logits = jax.random.normal(ks[0], (B, C, H, W), dtype=jnp.float32)
    targets = jax.random.randint(ks[1], (B, H, W), 0, C, dtype=jnp.int32)
    out = jax.block_until_ready(dice_loss(logits, targets))
    ref = jax.block_until_ready(_dice_loss_ref(logits, targets))
    assert jnp.allclose(out, ref, atol=1e-3, rtol=1e-3), (out, ref)

    # 2) odd spatial size: lane padding + in-kernel tail masking.
    B2, C2, H2, W2 = 2, 4, 9, 9
    logits2 = jax.random.normal(ks[2], (B2, C2, H2, W2), dtype=jnp.float32)
    targets2 = jax.random.randint(ks[3], (B2, H2, W2), 0, C2, dtype=jnp.int32)
    out2 = jax.block_until_ready(dice_loss(logits2, targets2))
    ref2 = jax.block_until_ready(_dice_loss_ref(logits2, targets2))
    assert jnp.allclose(out2, ref2, atol=1e-3, rtol=1e-3), (out2, ref2)

    # 3) multi-tile spatial reduction with a ragged (partial) last tile,
    #    bf16 logits + int8 targets; small forced tile keeps the test tiny
    #    (the production sizing would pick one large tile for this shape).
    B3, C3, H3, W3 = 2, 4, 80, 80
    logits3 = jax.random.normal(ks[4], (B3, C3, H3, W3), dtype=jnp.bfloat16)
    targets3 = jax.random.randint(ks[5], (B3, H3, W3), 0, C3, dtype=jnp.int32)
    out3 = jax.block_until_ready(dice_loss(logits3, targets3, tile_s_override=32))
    ref3 = jax.block_until_ready(_dice_loss_ref(logits3, targets3))
    assert jnp.allclose(out3, ref3, atol=2e-3, rtol=2e-3), (out3, ref3)

    print("KERNEL_OK")
</pallas_src>

<mosaic_0001>
module attributes {stable_mosaic.version = 11 : i64} {
  func.func @_dice_kernel(%arg0: i32, %arg1: i32, %arg2: memref<1x4x2x128xf32, #tpu.memory_space<vmem>>, %arg3: memref<1x2x128xi32, #tpu.memory_space<vmem>>, %arg4: memref<1x4x1xf32, #tpu.memory_space<vmem>>, %arg5: memref<1x4x128xf32, #tpu.memory_space<vmem>>, %arg6: memref<1x4x128xf32, #tpu.memory_space<vmem>>, %arg7: memref<1x4x128xf32, #tpu.memory_space<vmem>>) attributes {dimension_semantics = [#tpu.dimension_semantics<parallel>, #tpu.dimension_semantics<arbitrary>], iteration_bounds = array<i64: 2, 1>, scalar_prefetch = 0 : i64, scratch_operands = 3 : i64, tpu.core_type = #tpu.core_type<tc>, window_params = [{transform_indices = @transform_0, window_bounds = array<i64: 1, 4, 2, 128>}, {transform_indices = @transform_1, window_bounds = array<i64: 1, 2, 128>}, {transform_indices = @transform_2, window_bounds = array<i64: 1, 4, 1>}]} {
    %c0_i32 = arith.constant 0 : i32
    %0 = arith.cmpi eq, %arg1, %c0_i32 : i32
    %1 = arith.extui %0 : i1 to i32
    %c0_i32_0 = arith.constant 0 : i32
    %2 = arith.cmpi ne, %1, %c0_i32_0 : i32
    scf.if %2 {
      %cst_104 = arith.constant 0.000000e+00 : f32
      %114 = vector.broadcast %cst_104 : f32 to vector<1x4x128xf32>
      %c0_105 = arith.constant 0 : index
      %c0_106 = arith.constant 0 : index
      %c0_107 = arith.constant 0 : index
      %115 = vector.load %arg5[%c0_105, %c0_106, %c0_107] : memref<1x4x128xf32, #tpu.memory_space<vmem>>, vector<1x4x128xf32>
      tpu.vector_store %arg5[%c0_105, %c0_106, %c0_107], %114 {strides = array<i32>} : memref<1x4x128xf32, #tpu.memory_space<vmem>>, vector<1x4x128xf32>,
      %cst_108 = arith.constant 0.000000e+00 : f32
      %116 = vector.broadcast %cst_108 : f32 to vector<1x4x128xf32>
      %c0_109 = arith.constant 0 : index
      %c0_110 = arith.constant 0 : index
      %c0_111 = arith.constant 0 : index
      %117 = vector.load %arg6[%c0_109, %c0_110, %c0_111] : memref<1x4x128xf32, #tpu.memory_space<vmem>>, vector<1x4x128xf32>
      tpu.vector_store %arg6[%c0_109, %c0_110, %c0_111], %116 {strides = array<i32>} : memref<1x4x128xf32, #tpu.memory_space<vmem>>, vector<1x4x128xf32>,
      %cst_112 = arith.constant 0.000000e+00 : f32
      %118 = vector.broadcast %cst_112 : f32 to vector<1x4x128xf32>
      %c0_113 = arith.constant 0 : index
      %c0_114 = arith.constant 0 : index
      %c0_115 = arith.constant 0 : index
      %119 = vector.load %arg7[%c0_113, %c0_114, %c0_115] : memref<1x4x128xf32, #tpu.memory_space<vmem>>, vector<1x4x128xf32>
      tpu.vector_store %arg7[%c0_113, %c0_114, %c0_115], %118 {strides = array<i32>} : memref<1x4x128xf32, #tpu.memory_space<vmem>>, vector<1x4x128xf32>,
    } else {
    }
    %c0 = arith.constant 0 : index
    %c0_1 = arith.constant 0 : index
    %c0_2 = arith.constant 0 : index
    %c0_3 = arith.constant 0 : index
    %3 = vector.load %arg2[%c0, %c0_1, %c0_2, %c0_3] : memref<1x4x2x128xf32, #tpu.memory_space<vmem>>, vector<1x4x2x128xf32>
    %c0_4 = arith.constant 0 : index
    %c0_5 = arith.constant 0 : index
    %c0_6 = arith.constant 0 : index
    %4 = vector.load %arg3[%c0_4, %c0_5, %c0_6] : memref<1x2x128xi32, #tpu.memory_space<vmem>>, vector<1x2x128xi32>
    %cst = arith.constant dense<0xFF800000> : vector<1x2x128xf32>
    %5 = vector.multi_reduction <maximumf>, %3, %cst [1] : vector<1x4x2x128xf32> to vector<1x2x128xf32>
    %6 = vector.shape_cast %5 : vector<1x2x128xf32> to vector<1x1x2x128xf32>
    %7 = vector.broadcast %6 : vector<1x1x2x128xf32> to vector<1x4x2x128xf32>
    %8 = arith.subf %3, %7 : vector<1x4x2x128xf32>
    %9 = math.exp %8 : vector<1x4x2x128xf32>
    %cst_7 = arith.constant dense<0.000000e+00> : vector<1x2x128xf32>
    %10 = vector.multi_reduction <add>, %9, %cst_7 [1] : vector<1x4x2x128xf32> to vector<1x2x128xf32>
    %11 = vector.shape_cast %10 : vector<1x2x128xf32> to vector<1x1x2x128xf32>
    %12 = tpu.reciprocal %11 {approx = true} : vector<1x1x2x128xf32> -> vector<1x1x2x128xf32>
    %13 = vector.broadcast %12 : vector<1x1x2x128xf32> to vector<1x4x2x128xf32>
    %14 = arith.mulf %9, %13 : vector<1x4x2x128xf32>
    %15 = vector.extract_strided_slice %14 {offsets = [0, 0, 0, 0], sizes = [1, 1, 2, 128], strides = [1, 1, 1, 1]} : vector<1x4x2x128xf32> to vector<1x1x2x128xf32>
    %16 = vector.shape_cast %15 : vector<1x1x2x128xf32> to vector<1x2x128xf32>
    %c0_i32_8 = arith.constant 0 : i32
    %17 = vector.broadcast %c0_i32_8 : i32 to vector<1x2x128xi32>
    %18 = arith.cmpi eq, %4, %17 : vector<1x2x128xi32>
    %c0_9 = arith.constant 0 : index
    %c0_10 = arith.constant 0 : index
    %c0_11 = arith.constant 0 : index
    %19 = vector.load %arg5[%c0_9, %c0_10, %c0_11] : memref<1x4x128xf32, #tpu.memory_space<vmem>>, vector<1x1x128xf32>
    %cst_12 = arith.constant 0.000000e+00 : f32
    %20 = vector.broadcast %cst_12 : f32 to vector<1x2x128xf32>
    %21 = arith.select %18, %16, %20 : vector<1x2x128xi1>, vector<1x2x128xf32>
    %cst_13 = arith.constant dense<0.000000e+00> : vector<1x128xf32>
    %22 = vector.multi_reduction <add>, %21, %cst_13 [1] : vector<1x2x128xf32> to vector<1x128xf32>
    %23 = vector.shape_cast %22 : vector<1x128xf32> to vector<1x1x128xf32>
    %24 = arith.addf %19, %23 : vector<1x1x128xf32>
    %c0_14 = arith.constant 0 : index
    %c0_15 = arith.constant 0 : index
    %c0_16 = arith.constant 0 : index
    %25 = vector.load %arg5[%c0_14, %c0_15, %c0_16] : memref<1x4x128xf32, #tpu.memory_space<vmem>>, vector<1x1x128xf32>
    tpu.vector_store %arg5[%c0_14, %c0_15, %c0_16], %24 {strides = array<i32>} : memref<1x4x128xf32, #tpu.memory_space<vmem>>, vector<1x1x128xf32>,
    %c0_17 = arith.constant 0 : index
    %c0_18 = arith.constant 0 : index
    %c0_19 = arith.constant 0 : index
    %26 = vector.load %arg6[%c0_17, %c0_18, %c0_19] : memref<1x4x128xf32, #tpu.memory_space<vmem>>, vector<1x1x128xf32>
    %cst_20 = arith.constant dense<0.000000e+00> : vector<1x128xf32>
    %27 = vector.multi_reduction <add>, %16, %cst_20 [1] : vector<1x2x128xf32> to vector<1x128xf32>
    %28 = vector.shape_cast %27 : vector<1x128xf32> to vector<1x1x128xf32>
    %29 = arith.addf %26, %28 : vector<1x1x128xf32>
    %c0_21 = arith.constant 0 : index
    %c0_22 = arith.constant 0 : index
    %c0_23 = arith.constant 0 : index
    %30 = vector.load %arg6[%c0_21, %c0_22, %c0_23] : memref<1x4x128xf32, #tpu.memory_space<vmem>>, vector<1x1x128xf32>
    tpu.vector_store %arg6[%c0_21, %c0_22, %c0_23], %29 {strides = array<i32>} : memref<1x4x128xf32, #tpu.memory_space<vmem>>, vector<1x1x128xf32>,
    %c0_24 = arith.constant 0 : index
    %c0_25 = arith.constant 0 : index
    %c0_26 = arith.constant 0 : index
    %31 = vector.load %arg7[%c0_24, %c0_25, %c0_26] : memref<1x4x128xf32, #tpu.memory_space<vmem>>, vector<1x1x128xf32>
    %cst_27 = arith.constant 1.000000e+00 : f32
    %cst_28 = arith.constant 0.000000e+00 : f32
    %32 = vector.broadcast %cst_27 : f32 to vector<1x2x128xf32>
    %33 = vector.broadcast %cst_28 : f32 to vector<1x2x128xf32>
    %34 = arith.select %18, %32, %33 : vector<1x2x128xi1>, vector<1x2x128xf32>
    %cst_29 = arith.constant dense<0.000000e+00> : vector<1x128xf32>
    %35 = vector.multi_reduction <add>, %34, %cst_29 [1] : vector<1x2x128xf32> to vector<1x128xf32>
    %36 = vector.shape_cast %35 : vector<1x128xf32> to vector<1x1x128xf32>
    %37 = arith.addf %31, %36 : vector<1x1x128xf32>
    %c0_30 = arith.constant 0 : index
    %c0_31 = arith.constant 0 : index
    %c0_32 = arith.constant 0 : index
    %38 = vector.load %arg7[%c0_30, %c0_31, %c0_32] : memref<1x4x128xf32, #tpu.memory_space<vmem>>, vector<1x1x128xf32>
    tpu.vector_store %arg7[%c0_30, %c0_31, %c0_32], %37 {strides = array<i32>} : memref<1x4x128xf32, #tpu.memory_space<vmem>>, vector<1x1x128xf32>,
    %39 = vector.extract_strided_slice %14 {offsets = [0, 1, 0, 0], sizes = [1, 1, 2, 128], strides = [1, 1, 1, 1]} : vector<1x4x2x128xf32> to vector<1x1x2x128xf32>
    %40 = vector.shape_cast %39 : vector<1x1x2x128xf32> to vector<1x2x128xf32>
    %c1_i32 = arith.constant 1 : i32
    %41 = vector.broadcast %c1_i32 : i32 to vector<1x2x128xi32>
    %42 = arith.cmpi eq, %4, %41 : vector<1x2x128xi32>
    %c0_33 = arith.constant 0 : index
    %c1 = arith.constant 1 : index
    %c0_34 = arith.constant 0 : index
    %43 = vector.load %arg5[%c0_33, %c1, %c0_34] : memref<1x4x128xf32, #tpu.memory_space<vmem>>, vector<1x1x128xf32>
    %cst_35 = arith.constant 0.000000e+00 : f32
    %44 = vector.broadcast %cst_35 : f32 to vector<1x2x128xf32>
    %45 = arith.select %42, %40, %44 : vector<1x2x128xi1>, vector<1x2x128xf32>
    %cst_36 = arith.constant dense<0.000000e+00> : vector<1x128xf32>
    %46 = vector.multi_reduction <add>, %45, %cst_36 [1] : vector<1x2x128xf32> to vector<1x128xf32>
    %47 = vector.shape_cast %46 : vector<1x128xf32> to vector<1x1x128xf32>
    %48 = arith.addf %43, %47 : vector<1x1x128xf32>
    %c0_37 = arith.constant 0 : index
    %c1_38 = arith.constant 1 : index
    %c0_39 = arith.constant 0 : index
    %49 = vector.load %arg5[%c0_37, %c1_38, %c0_39] : memref<1x4x128xf32, #tpu.memory_space<vmem>>, vector<1x1x128xf32>
    tpu.vector_store %arg5[%c0_37, %c1_38, %c0_39], %48 {strides = array<i32>} : memref<1x4x128xf32, #tpu.memory_space<vmem>>, vector<1x1x128xf32>,
    %c0_40 = arith.constant 0 : index
    %c1_41 = arith.constant 1 : index
    %c0_42 = arith.constant 0 : index
    %50 = vector.load %arg6[%c0_40, %c1_41, %c0_42] : memref<1x4x128xf32, #tpu.memory_space<vmem>>, vector<1x1x128xf32>
    %cst_43 = arith.constant dense<0.000000e+00> : vector<1x128xf32>
    %51 = vector.multi_reduction <add>, %40, %cst_43 [1] : vector<1x2x128xf32> to vector<1x128xf32>
    %52 = vector.shape_cast %51 : vector<1x128xf32> to vector<1x1x128xf32>
    %53 = arith.addf %50, %52 : vector<1x1x128xf32>
    %c0_44 = arith.constant 0 : index
    %c1_45 = arith.constant 1 : index
    %c0_46 = arith.constant 0 : index
    %54 = vector.load %arg6[%c0_44, %c1_45, %c0_46] : memref<1x4x128xf32, #tpu.memory_space<vmem>>, vector<1x1x128xf32>
    tpu.vector_store %arg6[%c0_44, %c1_45, %c0_46], %53 {strides = array<i32>} : memref<1x4x128xf32, #tpu.memory_space<vmem>>, vector<1x1x128xf32>,
    %c0_47 = arith.constant 0 : index
    %c1_48 = arith.constant 1 : index
    %c0_49 = arith.constant 0 : index
    %55 = vector.load %arg7[%c0_47, %c1_48, %c0_49] : memref<1x4x128xf32, #tpu.memory_space<vmem>>, vector<1x1x128xf32>
    %cst_50 = arith.constant 1.000000e+00 : f32
    %cst_51 = arith.constant 0.000000e+00 : f32
    %56 = vector.broadcast %cst_50 : f32 to vector<1x2x128xf32>
    %57 = vector.broadcast %cst_51 : f32 to vector<1x2x128xf32>
    %58 = arith.select %42, %56, %57 : vector<1x2x128xi1>, vector<1x2x128xf32>
    %cst_52 = arith.constant dense<0.000000e+00> : vector<1x128xf32>
    %59 = vector.multi_reduction <add>, %58, %cst_52 [1] : vector<1x2x128xf32> to vector<1x128xf32>
    %60 = vector.shape_cast %59 : vector<1x128xf32> to vector<1x1x128xf32>
    %61 = arith.addf %55, %60 : vector<1x1x128xf32>
    %c0_53 = arith.constant 0 : index
    %c1_54 = arith.constant 1 : index
    %c0_55 = arith.constant 0 : index
    %62 = vector.load %arg7[%c0_53, %c1_54, %c0_55] : memref<1x4x128xf32, #tpu.memory_space<vmem>>, vector<1x1x128xf32>
    tpu.vector_store %arg7[%c0_53, %c1_54, %c0_55], %61 {strides = array<i32>} : memref<1x4x128xf32, #tpu.memory_space<vmem>>, vector<1x1x128xf32>,
    %63 = vector.extract_strided_slice %14 {offsets = [0, 2, 0, 0], sizes = [1, 1, 2, 128], strides = [1, 1, 1, 1]} : vector<1x4x2x128xf32> to vector<1x1x2x128xf32>
    %64 = vector.shape_cast %63 : vector<1x1x2x128xf32> to vector<1x2x128xf32>
    %c2_i32 = arith.constant 2 : i32
    %65 = vector.broadcast %c2_i32 : i32 to vector<1x2x128xi32>
    %66 = arith.cmpi eq, %4, %65 : vector<1x2x128xi32>
    %c0_56 = arith.constant 0 : index
    %c2 = arith.constant 2 : index
    %c0_57 = arith.constant 0 : index
    %67 = vector.load %arg5[%c0_56, %c2, %c0_57] : memref<1x4x128xf32, #tpu.memory_space<vmem>>, vector<1x1x128xf32>
    %cst_58 = arith.constant 0.000000e+00 : f32
    %68 = vector.broadcast %cst_58 : f32 to vector<1x2x128xf32>
    %69 = arith.select %66, %64, %68 : vector<1x2x128xi1>, vector<1x2x128xf32>
    %cst_59 = arith.constant dense<0.000000e+00> : vector<1x128xf32>
    %70 = vector.multi_reduction <add>, %69, %cst_59 [1] : vector<1x2x128xf32> to vector<1x128xf32>
    %71 = vector.shape_cast %70 : vector<1x128xf32> to vector<1x1x128xf32>
    %72 = arith.addf %67, %71 : vector<1x1x128xf32>
    %c0_60 = arith.constant 0 : index
    %c2_61 = arith.constant 2 : index
    %c0_62 = arith.constant 0 : index
    %73 = vector.load %arg5[%c0_60, %c2_61, %c0_62] : memref<1x4x128xf32, #tpu.memory_space<vmem>>, vector<1x1x128xf32>
    tpu.vector_store %arg5[%c0_60, %c2_61, %c0_62], %72 {strides = array<i32>} : memref<1x4x128xf32, #tpu.memory_space<vmem>>, vector<1x1x128xf32>,
    %c0_63 = arith.constant 0 : index
    %c2_64 = arith.constant 2 : index
    %c0_65 = arith.constant 0 : index
    %74 = vector.load %arg6[%c0_63, %c2_64, %c0_65] : memref<1x4x128xf32, #tpu.memory_space<vmem>>, vector<1x1x128xf32>
    %cst_66 = arith.constant dense<0.000000e+00> : vector<1x128xf32>
    %75 = vector.multi_reduction <add>, %64, %cst_66 [1] : vector<1x2x128xf32> to vector<1x128xf32>
    %76 = vector.shape_cast %75 : vector<1x128xf32> to vector<1x1x128xf32>
    %77 = arith.addf %74, %76 : vector<1x1x128xf32>
    %c0_67 = arith.constant 0 : index
    %c2_68 = arith.constant 2 : index
    %c0_69 = arith.constant 0 : index
    %78 = vector.load %arg6[%c0_67, %c2_68, %c0_69] : memref<1x4x128xf32, #tpu.memory_space<vmem>>, vector<1x1x128xf32>
    tpu.vector_store %arg6[%c0_67, %c2_68, %c0_69], %77 {strides = array<i32>} : memref<1x4x128xf32, #tpu.memory_space<vmem>>, vector<1x1x128xf32>,
    %c0_70 = arith.constant 0 : index
    %c2_71 = arith.constant 2 : index
    %c0_72 = arith.constant 0 : index
    %79 = vector.load %arg7[%c0_70, %c2_71, %c0_72] : memref<1x4x128xf32, #tpu.memory_space<vmem>>, vector<1x1x128xf32>
    %cst_73 = arith.constant 1.000000e+00 : f32
    %cst_74 = arith.constant 0.000000e+00 : f32
    %80 = vector.broadcast %cst_73 : f32 to vector<1x2x128xf32>
    %81 = vector.broadcast %cst_74 : f32 to vector<1x2x128xf32>
    %82 = arith.select %66, %80, %81 : vector<1x2x128xi1>, vector<1x2x128xf32>
    %cst_75 = arith.constant dense<0.000000e+00> : vector<1x128xf32>
    %83 = vector.multi_reduction <add>, %82, %cst_75 [1] : vector<1x2x128xf32> to vector<1x128xf32>
    %84 = vector.shape_cast %83 : vector<1x128xf32> to vector<1x1x128xf32>
    %85 = arith.addf %79, %84 : vector<1x1x128xf32>
    %c0_76 = arith.constant 0 : index
    %c2_77 = arith.constant 2 : index
    %c0_78 = arith.constant 0 : index
    %86 = vector.load %arg7[%c0_76, %c2_77, %c0_78] : memref<1x4x128xf32, #tpu.memory_space<vmem>>, vector<1x1x128xf32>
    tpu.vector_store %arg7[%c0_76, %c2_77, %c0_78], %85 {strides = array<i32>} : memref<1x4x128xf32, #tpu.memory_space<vmem>>, vector<1x1x128xf32>,
    %87 = vector.extract_strided_slice %14 {offsets = [0, 3, 0, 0], sizes = [1, 1, 2, 128], strides = [1, 1, 1, 1]} : vector<1x4x2x128xf32> to vector<1x1x2x128xf32>
    %88 = vector.shape_cast %87 : vector<1x1x2x128xf32> to vector<1x2x128xf32>
    %c3_i32 = arith.constant 3 : i32
    %89 = vector.broadcast %c3_i32 : i32 to vector<1x2x128xi32>
    %90 = arith.cmpi eq, %4, %89 : vector<1x2x128xi32>
    %c0_79 = arith.constant 0 : index
    %c3 = arith.constant 3 : index
    %c0_80 = arith.constant 0 : index
    %91 = vector.load %arg5[%c0_79, %c3, %c0_80] : memref<1x4x128xf32, #tpu.memory_space<vmem>>, vector<1x1x128xf32>
    %cst_81 = arith.constant 0.000000e+00 : f32
    %92 = vector.broadcast %cst_81 : f32 to vector<1x2x128xf32>
    %93 = arith.select %90, %88, %92 : vector<1x2x128xi1>, vector<1x2x128xf32>
    %cst_82 = arith.constant dense<0.000000e+00> : vector<1x128xf32>
    %94 = vector.multi_reduction <add>, %93, %cst_82 [1] : vector<1x2x128xf32> to vector<1x128xf32>
    %95 = vector.shape_cast %94 : vector<1x128xf32> to vector<1x1x128xf32>
    %96 = arith.addf %91, %95 : vector<1x1x128xf32>
    %c0_83 = arith.constant 0 : index
    %c3_84 = arith.constant 3 : index
    %c0_85 = arith.constant 0 : index
    %97 = vector.load %arg5[%c0_83, %c3_84, %c0_85] : memref<1x4x128xf32, #tpu.memory_space<vmem>>, vector<1x1x128xf32>
    tpu.vector_store %arg5[%c0_83, %c3_84, %c0_85], %96 {strides = array<i32>} : memref<1x4x128xf32, #tpu.memory_space<vmem>>, vector<1x1x128xf32>,
    %c0_86 = arith.constant 0 : index
    %c3_87 = arith.constant 3 : index
    %c0_88 = arith.constant 0 : index
    %98 = vector.load %arg6[%c0_86, %c3_87, %c0_88] : memref<1x4x128xf32, #tpu.memory_space<vmem>>, vector<1x1x128xf32>
    %cst_89 = arith.constant dense<0.000000e+00> : vector<1x128xf32>
    %99 = vector.multi_reduction <add>, %88, %cst_89 [1] : vector<1x2x128xf32> to vector<1x128xf32>
    %100 = vector.shape_cast %99 : vector<1x128xf32> to vector<1x1x128xf32>
    %101 = arith.addf %98, %100 : vector<1x1x128xf32>
    %c0_90 = arith.constant 0 : index
    %c3_91 = arith.constant 3 : index
    %c0_92 = arith.constant 0 : index
    %102 = vector.load %arg6[%c0_90, %c3_91, %c0_92] : memref<1x4x128xf32, #tpu.memory_space<vmem>>, vector<1x1x128xf32>
    tpu.vector_store %arg6[%c0_90, %c3_91, %c0_92], %101 {strides = array<i32>} : memref<1x4x128xf32, #tpu.memory_space<vmem>>, vector<1x1x128xf32>,
    %c0_93 = arith.constant 0 : index
    %c3_94 = arith.constant 3 : index
    %c0_95 = arith.constant 0 : index
    %103 = vector.load %arg7[%c0_93, %c3_94, %c0_95] : memref<1x4x128xf32, #tpu.memory_space<vmem>>, vector<1x1x128xf32>
    %cst_96 = arith.constant 1.000000e+00 : f32
    %cst_97 = arith.constant 0.000000e+00 : f32
    %104 = vector.broadcast %cst_96 : f32 to vector<1x2x128xf32>
    %105 = vector.broadcast %cst_97 : f32 to vector<1x2x128xf32>
    %106 = arith.select %90, %104, %105 : vector<1x2x128xi1>, vector<1x2x128xf32>
    %cst_98 = arith.constant dense<0.000000e+00> : vector<1x128xf32>
    %107 = vector.multi_reduction <add>, %106, %cst_98 [1] : vector<1x2x128xf32> to vector<1x128xf32>
    %108 = vector.shape_cast %107 : vector<1x128xf32> to vector<1x1x128xf32>
    %109 = arith.addf %103, %108 : vector<1x1x128xf32>
    %c0_99 = arith.constant 0 : index
    %c3_100 = arith.constant 3 : index
    %c0_101 = arith.constant 0 : index
    %110 = vector.load %arg7[%c0_99, %c3_100, %c0_101] : memref<1x4x128xf32, #tpu.memory_space<vmem>>, vector<1x1x128xf32>
    tpu.vector_store %arg7[%c0_99, %c3_100, %c0_101], %109 {strides = array<i32>} : memref<1x4x128xf32, #tpu.memory_space<vmem>>, vector<1x1x128xf32>,
    %c0_i32_102 = arith.constant 0 : i32
    %111 = arith.cmpi eq, %arg1, %c0_i32_102 : i32
    %112 = arith.extui %111 : i1 to i32
    %c0_i32_103 = arith.constant 0 : i32
    %113 = arith.cmpi ne, %112, %c0_i32_103 : i32
    scf.if %113 {
      %c0_104 = arith.constant 0 : index
      %c0_105 = arith.constant 0 : index
      %c0_106 = arith.constant 0 : index
      %114 = vector.load %arg5[%c0_104, %c0_105, %c0_106] : memref<1x4x128xf32, #tpu.memory_space<vmem>>, vector<1x4x128xf32>
      %cst_107 = arith.constant dense<0.000000e+00> : vector<1x4xf32>
      %115 = vector.multi_reduction <add>, %114, %cst_107 [2] : vector<1x4x128xf32> to vector<1x4xf32>
      %116 = vector.shape_cast %115 : vector<1x4xf32> to vector<1x4x1xf32>
      %c0_108 = arith.constant 0 : index
      %c0_109 = arith.constant 0 : index
      %c0_110 = arith.constant 0 : index
      %117 = vector.load %arg6[%c0_108, %c0_109, %c0_110] : memref<1x4x128xf32, #tpu.memory_space<vmem>>, vector<1x4x128xf32>
      %cst_111 = arith.constant dense<0.000000e+00> : vector<1x4xf32>
      %118 = vector.multi_reduction <add>, %117, %cst_111 [2] : vector<1x4x128xf32> to vector<1x4xf32>
      %119 = vector.shape_cast %118 : vector<1x4xf32> to vector<1x4x1xf32>
      %c0_112 = arith.constant 0 : index
      %c0_113 = arith.constant 0 : index
      %c0_114 = arith.constant 0 : index
      %120 = vector.load %arg7[%c0_112, %c0_113, %c0_114] : memref<1x4x128xf32, #tpu.memory_space<vmem>>, vector<1x4x128xf32>
      %cst_115 = arith.constant dense<0.000000e+00> : vector<1x4xf32>
      %121 = vector.multi_reduction <add>, %120, %cst_115 [2] : vector<1x4x128xf32> to vector<1x4xf32>
      %122 = vector.shape_cast %121 : vector<1x4xf32> to vector<1x4x1xf32>
      %cst_116 = arith.constant 2.000000e+00 : f32
      %123 = vector.broadcast %cst_116 : f32 to vector<1x4x1xf32>
      %124 = arith.mulf %123, %116 : vector<1x4x1xf32>
      %cst_117 = arith.constant 9.99999974E-6 : f32
      %125 = vector.broadcast %cst_117 : f32 to vector<1x4x1xf32>
      %126 = arith.addf %124, %125 : vector<1x4x1xf32>
      %127 = arith.addf %119, %122 : vector<1x4x1xf32>
      %cst_118 = arith.constant 9.99999974E-6 : f32
      %128 = vector.broadcast %cst_118 : f32 to vector<1x4x1xf32>
      %129 = arith.addf %127, %128 : vector<1x4x1xf32>
      %130 = arith.divf %126, %129 : vector<1x4x1xf32>
      %c0_119 = arith.constant 0 : index
      %c0_120 = arith.constant 0 : index
      %c0_121 = arith.constant 0 : index
      %131 = vector.load %arg4[%c0_119, %c0_120, %c0_121] : memref<1x4x1xf32, #tpu.memory_space<vmem>>, vector<1x4x1xf32>
      tpu.vector_store %arg4[%c0_119, %c0_120, %c0_121], %130 {strides = array<i32>} : memref<1x4x1xf32, #tpu.memory_space<vmem>>, vector<1x4x1xf32>,
    } else {
    }
    return
  }
  func.func @transform_0(%arg0: i32, %arg1: i32) -> (i32, i32, i32, i32) {
    %c0_i32 = arith.constant 0 : i32
    %c0_i32_0 = arith.constant 0 : i32
    %c0_i32_1 = arith.constant 0 : i32
    return %arg0, %c0_i32, %arg1, %c0_i32_0 : i32, i32, i32, i32
  }
  func.func @transform_1(%arg0: i32, %arg1: i32) -> (i32, i32, i32) {
    %c0_i32 = arith.constant 0 : i32
    %c0_i32_0 = arith.constant 0 : i32
    return %arg0, %arg1, %c0_i32 : i32, i32, i32
  }
  func.func @transform_2(%arg0: i32, %arg1: i32) -> (i32, i32, i32) {
    %c0_i32 = arith.constant 0 : i32
    %c0_i32_0 = arith.constant 0 : i32
    %c0_i32_1 = arith.constant 0 : i32
    return %arg0, %c0_i32, %c0_i32_0 : i32, i32, i32
  }
}

</mosaic_0001>

<bundles_post_ra>
// kernel: tpu_custom_call.1
= control target key start
LH: loop header
LB: loop body
LE: loop exit
PB: predicated region body
PF: predicated region fallthrough
CT: control target
= control target key end

     0   :  { %7 = vsyncpa [#allocation6], 0  ;;  %s905_s0 = inlined_call_operand.hbm [shape: f32[2,4,2,128], index: 0, kind: input, shape index: {}]   ;;  %s906_s1 = inlined_call_operand.hbm [shape: s32[2,2,128], index: 1, kind: input, shape index: {}]   ;;  %s907_s2 = inlined_call_operand.vmem [shape: f32[2,4,1], index: 2, kind: output, shape index: {}]  }
   0x1   :  { %9 = vsyncpa [#allocation6 + $0x1], 0 }
   0x2   :  { %10 = vsyncpa [#allocation8], 0 }
   0x3   :  { %12 = vsyncpa [#allocation8 + $0x1], 0  ;;  %s739_s9 = smov 0   ;;  %s741_s10 = smov 0  }
   0x4   :  { %s743_s11 = smov 0   ;;  %s745_s12 = smov 0  }
   0x5   :  { %s747_s13 = smov 0   ;;  %s749_s14 = smov 0  }
   0x6 LB: > { %s516_s15 = sadd.s32 4294967295, %s717_s14   ;;  %s30_s16 = sadd.s32 1, %s713_s13  ;;  %s717_s14 = sphi %s749_s14, %s18_s14   ;;  %s713_s13 = sphi %s747_s13, %s916_s13   ;;  %s709_s12 = sphi %s745_s12, %s915_s12   ;;  %s705_s11 = sphi %s743_s11, %s914_s11   ;;  %s701_s10 = sphi %s741_s10, %s913_s10   ;;  %s697_s9 = sphi %s739_s9, %s912_s9  }
   0x7   : > { %p32_p0 = scmp.ge.s32.totalorder %s30_s16, 2  ;;  %s39_s17 = sadd.s32 1, %s705_s11 }
   0x8   : > { %p46_p1 = scmp.ne.s32.totalorder %s705_s11, %s701_s10  ;;  %p47_p2 = scmp.eq.s32.totalorder %s717_s14, 0 }
   0x9   : > { %s918_s16 = smov (%p32_p0, %s30_s16), 0  ;;  %p52_p4 = scmp.ne.s32.totalorder %s701_s10, %s697_s9 }
   0xa   : > { %p775_p3 = por %p47_p2, %p46_p1  ;;  %s34_s19 = ssub.s32 %s713_s13, %s918_s16 }
   0xb   : > { %p53_p5 = scmp.eq.s32.totalorder %s516_s15, 0  ;;  %p37_p6 = scmp.eq.s32.totalorder %s34_s19, 0 }
   0xc   : > { %p543_p8 = scmp.lt.s32.totalorder %s717_s14, 2  ;;  %s791_s22 = sand.u32 1, %s705_s11  }
   0xd   : > { %p782_p7 = por %p53_p5, %p52_p4  ;;  %s531_s23 = sshll.u32 %s713_s13, 7 }
   0xe   : > { %s788_s21 = scalar_select %p37_p6, %s705_s11, %s39_s17  }
   0xf   : > { %s520_s24 = sshll.u32 %s791_s22, 3  ;;  %s141_s27 = scalar_lea.hbm %s905_s0, %s531_s23 }
  0x10   : > { %s134_s28 = scalar_lea.vmem [#allocation5], %s520_s24  ;;  %p800_p9 = pnand %p543_p8, %p775_p3 }
  0x11   : > { %s142_s29 = sshll.u32 %s134_s28, 4  ;;  %s131_s3 = scalar_lea.sflag [#allocation6], %s791_s22  ;;  %s143_s29 = int_to_ptr.vmem [resolvable:$true] %s142_s29 }
  0x12   : > { %p609_p10 = pneg %p800_p9  ;;  %s620_s4 = scalar_lea.vmem %s143_s29, 128 }
  0x13   : > { %p621_p11 = scmp.ne.s32.totalorder %s143_s29, %s620_s4  ;;  %s719_s5 = smov [#allocation5]  }
  0x14   : > { %s625_s6 = sshll.u32 %s719_s5, 4  ;;  %s626_s6 = int_to_ptr.vmem [resolvable:$false] %s625_s6 }
  0x15   : > { %p623_p12 = pnand %p621_p11, %p609_p10  ;;  %s627_s7 = scalar_lea.vmem %s626_s6, 256 }
  0x16   : > { %p628_p0 = scmp.lt.s32.totalorder %s143_s29, %s626_s6  ;;  %p629_p1 = scmp.lt.s32.totalorder %s627_s7, %s620_s4 }
  0x17   : > { %p624_p13 = pneg %p623_p12 }
  0x18   : > { %p630_p2 = por %p629_p1, %p628_p0 }
  0x1a   : > { %p631_p3 = pnand %p630_p2, %p624_p13 }
  0x1c   : > { %634 = shalt.err (!%p631_p3)
}
  0x1d   : > { %s720_s8 = smov 32   ;;  %s721_s9 = smov 2  }
  0x1e   : > { %539 = dma.hbm_to_vmem [thread:$0]  (!%p800_p9), %s141_s27, 128, %s143_s29, %s131_s3, %s720_s8, %s720_s8, %s721_s9  }
  0x1f   : > { %p525_p4 = scmp.ge.s32.totalorder %s717_s14, 1  ;;  %p169_p5 = scmp.lt.s32.totalorder %s717_s14, 3 }
  0x20   : > { %s523_s15 = sshll.u32 %s791_s22, 1  ;;  %s524_s18 = sshll.u32 %s713_s13, 5 }
  0x21   : > { %p815_p6 = pnand %p525_p4, %p169_p5  ;;  %s156_s19 = scalar_lea.vmem [#allocation7], %s523_s15 }
  0x22   : > { %s164_s23 = sshll.u32 %s156_s19, 4  ;;  %s162_s26 = scalar_lea.hbm %s906_s1, %s524_s18  ;;  %s165_s23 = int_to_ptr.vmem [resolvable:$true] %s164_s23 }
  0x23   : > { %s153_s28 = scalar_lea.sflag [#allocation8], %s791_s22  ;;  %s648_s4 = scalar_lea.vmem %s165_s23, 32 }
  0x24   : > { %p649_p8 = scmp.ne.s32.totalorder %s165_s23, %s648_s4  ;;  %s722_s27 = smov [#allocation7]  }
  0x25   : > { %s653_s29 = sshll.u32 %s722_s27, 4  ;;  %s654_s29 = int_to_ptr.vmem [resolvable:$false] %s653_s29 }
  0x26   : > { %p651_p11 = pnand %p649_p8, %p609_p10  ;;  %s655_s3 = scalar_lea.vmem %s654_s29, 64 }
  0x27   : > { %p656_p13 = scmp.lt.s32.totalorder %s165_s23, %s654_s29  ;;  %p657_p0 = scmp.lt.s32.totalorder %s655_s3, %s648_s4 }
  0x28   : > { %p652_p12 = pneg %p651_p11 }
  0x29   : > { %p658_p1 = por %p657_p0, %p656_p13 }
  0x2b   : > { %p659_p2 = pnand %p658_p1, %p652_p12 }
  0x2d   : > { %662 = shalt.err (!%p659_p2)
}
  0x2e   : > { %542 = dma.hbm_to_vmem [thread:$0]  (!%p800_p9), %s162_s26, 32, %s165_s23, %s153_s28  }
  0x2f   : > { %173 = sbr.rel (%p815_p6) target bundleno = 294 (0x126), region = 28  ;;  %s175_s22 = sand.u32 (!%p815_p6), 1, %s701_s10  }
  0x30   : > { %s526_s5 = sshll.u32 (!%p815_p6), %s175_s22, 3  ;;  %s176_s6 = scalar_lea.sflag (!%p815_p6), [#allocation6], %s175_s22 }
  0x31   : > { %s179_s7 = scalar_lea.vmem (!%p815_p6), [#allocation5], %s526_s5 }
  0x34   : > { %688 = dma.done.wait (%p782_p7), %s176_s6, 128  }
  0x35   : > { %690 = vsyncadd (%p782_p7), %s176_s6, 4294967168  ;;  %s527_s8 = sshll.u32 %s175_s22, 1  ;;  %s185_s9 = scalar_lea.sflag [#allocation8], %s175_s22 }
  0x36   : > { %s188_s15 = scalar_lea.vmem [#allocation7], %s527_s8 }
  0x37   : > { %692 = dma.done.wait (%p782_p7), %s185_s9, 32  }
  0x38   : > { %694 = vsyncadd (%p782_p7), %s185_s9, 4294967264  ;;  %v723_v0 = vmov 0.0   ;;  %vm229_vm0 = vcmask 1041408   ;;  %v224_v1 = vld [vmem:[%s179_s7] sm:$0x3]  ;;  %vm397_vm5 = vcmask 1043456  }
  0x39   : > { %222 = vst [vmem:[#allocation3] sm:$0xf] %v723_v0  ;;  %221 = vst [vmem:[#allocation2] sm:$0xf] %v723_v0  ;;  %v225_v2 = vld [vmem:[%s179_s7 + $0x2] sm:$0x3] }
  0x3a   : > { %223 = vst [vmem:[#allocation4] sm:$0xf] %v723_v0  ;;  %v226_v3 = vld [vmem:[%s179_s7 + $0x4] sm:$0x3]  ;;  %v227_v4 = vld [vmem:[%s179_s7 + $0x6] sm:$0x3] }
  0x3b   : > { %v230_v5 = vsel %vm229_vm0, %v224_v1, -inf  ;;  %v231_v6 = vsel %vm229_vm0, %v225_v2, -inf  ;;  %v232_v7 = vsel %vm229_vm0, %v226_v3, -inf  ;;  %v233_v8 = vsel %vm229_vm0, %v227_v4, -inf  ;;  %v844_v11 = vld [vmem:[%s188_s15] sm:$0x3] }
  0x3c   : > { %v234_v9 = vmax.f32 %v230_v5, %v231_v6  ;;  %v235_v10 = vmax.f32 %v232_v7, %v233_v8  ;;  %vm261_vm1 = vcmp.eq.s32.totalorder %v844_v11, 0  ;;  %vm294_vm2 = vcmp.eq.s32.totalorder %v844_v11, 1  ;;  %p213_p7 = scmp.lt.s32.totalorder %s709_s12, 1 }
  0x3d   : > { %v284_v13 = vsel %vm261_vm1, 1.0, %v723_v0  ;;  %v317_v14 = vsel %vm294_vm2, 1.0, %v723_v0  ;;  %vm327_vm3 = vcmp.eq.s32.totalorder %v844_v11, 2  ;;  %vm360_vm4 = vcmp.eq.s32.totalorder %v844_v11, 3 }
  0x3e   : > { %v236_v12 = vmax.f32 %v234_v9, %v235_v10  ;;  %v285_v15 = vsel %vm229_vm0, %v284_v13, 0.0  ;;  %v318_v16 = vsel %vm229_vm0, %v317_v14, 0.0  ;;  %v350_v17 = vsel %vm327_vm3, 1.0, %v723_v0  ;;  %s920_s12 = smov (!%p213_p7, %s709_s12), 1 }
  0x3f   : > { %v286_v22 = vrot.slane %v285_v15, 4  ;;  %v319_v23 = vrot.slane %v318_v16, 4  ;;  %v351_v24 = vsel %vm229_vm0, %v350_v17, 0.0  ;;  %v383_v25 = vsel %vm360_vm4, 1.0, %v723_v0  ;;  %s528_s20 = sshll.u32 %s920_s12, 2 }
  0x40   : > { %v237_v18 = vsub.f32 %v224_v1, %v236_v12  ;;  %v238_v19 = vsub.f32 %v225_v2, %v236_v12  ;;  %v239_v20 = vsub.f32 %v226_v3, %v236_v12  ;;  %v240_v21 = vsub.f32 %v227_v4, %v236_v12  ;;  %s216_s18 = scalar_lea.vmem %s907_s2, %s528_s20 }
  0x41   : > { %v287_v30 = vadd.f32 %v286_v22, %v285_v15  ;;  %v320_v31 = vadd.f32 %v319_v23, %v318_v16  ;;  %v352_v32 = vrot.slane %v351_v24, 4  ;;  %v384_v33 = vsel %vm229_vm0, %v383_v25, 0.0  ;;  %v283_v45 = vld [vmem:[#allocation4] sm:$0x1]  ;;  %v316_v46 = vld [vmem:[#allocation4 + $0x1] sm:$0x1] }
  0x42   : > { %v241_v26 = vmul.f32 1.442695, %v237_v18  ;;  %v243_v27 = vmul.f32 1.442695, %v238_v19  ;;  %v245_v28 = vmul.f32 1.442695, %v239_v20 }
  0x43   : > { %v247_v29 = vmul.f32 1.442695, %v240_v21  ;;  %v288_v34 = vrot.slane %v287_v30, 2  ;;  %v321_v35 = vrot.slane %v320_v31, 2  ;;  %v353_v36 = vadd.f32 %v352_v32, %v351_v24  ;;  %v349_v51 = vld [vmem:[#allocation4 + $0x2] sm:$0x1] }
  0x44   : > { %595 = vpow2.f32 %v241_v26  ;;  %v385_v37 = vrot.slane %v384_v33, 4  ;;  %v382_v58 = vld [vmem:[#allocation4 + $0x3] sm:$0x1]  ;;  %vm415_vm6 = vcmask 3072  }
  0x45   : > { %597 = vpow2.f32 %v243_v27  ;;  %v289_v38 = vadd.f32 %v288_v34, %v287_v30  ;;  %v322_v39 = vadd.f32 %v321_v35, %v320_v31  ;;  %v354_v40 = vrot.slane %v353_v36, 2 }
  0x46   : > { %599 = vpow2.f32 %v245_v28  ;;  %v386_v41 = vadd.f32 %v385_v37, %v384_v33 }
  0x47   : > { %601 = vpow2.f32 %v247_v29  ;;  %v290_v42 = vrot.slane %v289_v38, 1  ;;  %v323_v43 = vrot.slane %v322_v39, 1  ;;  %v355_v44 = vadd.f32 %v354_v40, %v353_v36 }
  0x48   : > { %v387_v47 = vrot.slane %v386_v41, 2 }
  0x49   : > { %v291_v48 = vadd.f32 %v290_v42, %v289_v38  ;;  %v324_v49 = vadd.f32 %v323_v43, %v322_v39  ;;  %v356_v50 = vrot.slane %v355_v44, 1 }
  0x4a   : > { %v388_v52 = vadd.f32 %v387_v47, %v386_v41 }
  0x4b   : > { %v292_v53 = vadd.f32 %v291_v48, %v283_v45  ;;  %v325_v54 = vadd.f32 %v324_v49, %v316_v46  ;;  %v357_v55 = vadd.f32 %v356_v50, %v355_v44  ;;  %v273_v45 = vld [vmem:[#allocation3] sm:$0x1]  ;;  %v306_v46 = vld [vmem:[#allocation3 + $0x1] sm:$0x1] }
  0x4c   : > { %v389_v56 = vrot.slane %v388_v52, 1 }
  0x4d   : > { %293 = vst [vmem:[#allocation4] sm:$0x1] %v292_v53  ;;  %326 = vst [vmem:[#allocation4 + $0x1] sm:$0x1] %v325_v54  ;;  %v358_v57 = vadd.f32 %v357_v55, %v349_v51  ;;  %v339_v53 = vld [vmem:[#allocation3 + $0x2] sm:$0x1] }
  0x4e   : > { %v390_v59 = vadd.f32 %v389_v56, %v388_v52  ;;  %v372_v56 = vld [vmem:[#allocation3 + $0x3] sm:$0x1] }
  0x4f   : > { %359 = vst [vmem:[#allocation4 + $0x2] sm:$0x1] %v358_v57 }
  0x50   : > { %v391_v63 = vadd.f32 %v390_v59, %v382_v58 }
  0x51   : > { %v596_v60 = vpop.eup %595 }
  0x52   : > { %v598_v61 = vpop.eup %597  ;;  %v249_v62 = vsel %vm229_vm0, %v596_v60, 0.0  ;;  %392 = vst [vmem:[#allocation4 + $0x3] sm:$0x1] %v391_v63 }
  0x53   : > { %v600_v0 = vpop.eup %599  ;;  %v250_v1 = vsel %vm229_vm0, %v598_v61, 0.0 }
  0x54   : > { %v602_v2 = vpop.eup %601  ;;  %v251_v3 = vadd.f32 %v250_v1, %v249_v62  ;;  %v252_v4 = vsel %vm229_vm0, %v600_v0, 0.0 }
  0x55   : > { %v254_v5 = vsel %vm229_vm0, %v602_v2, 0.0 }
  0x56   : > { %v253_v6 = vadd.f32 %v252_v4, %v251_v3 }
  0x58   : > { %v255_v7 = vadd.f32 %v254_v5, %v253_v6 }
  0x5a   : > { %603 = vrcp.f32 %v255_v7 }
  0x67   : > { %v604_v8 = vpop.eup %603 }
  0x68   : > { %v257_v9 = vmul.f32 %v604_v8, %v596_v60  ;;  %v258_v10 = vmul.f32 %v604_v8, %v598_v61  ;;  %v259_v12 = vmul.f32 %v604_v8, %v600_v0  ;;  %v260_v13 = vmul.f32 %v604_v8, %v602_v2 }
  0x6a   : > { %v274_v14 = vsel %vm229_vm0, %v257_v9, 0.0  ;;  %v307_v15 = vsel %vm229_vm0, %v258_v10, 0.0  ;;  %v340_v16 = vsel %vm229_vm0, %v259_v12, 0.0  ;;  %v373_v17 = vsel %vm229_vm0, %v260_v13, 0.0 }
  0x6b   : > { %v275_v18 = vrot.slane %v274_v14, 4  ;;  %v308_v19 = vrot.slane %v307_v15, 4  ;;  %v341_v20 = vrot.slane %v340_v16, 4  ;;  %v374_v21 = vrot.slane %v373_v17, 4 }
  0x6c   : > { %v263_v22 = vsel %vm261_vm1, %v257_v9, 0.0  ;;  %v296_v23 = vsel %vm294_vm2, %v258_v10, 0.0  ;;  %v329_v24 = vsel %vm327_vm3, %v259_v12, 0.0  ;;  %v362_v25 = vsel %vm360_vm4, %v260_v13, 0.0  ;;  %v262_v9 = vld [vmem:[#allocation2] sm:$0x1] }
  0x6d   : > { %v276_v26 = vadd.f32 %v275_v18, %v274_v14  ;;  %v309_v27 = vadd.f32 %v308_v19, %v307_v15  ;;  %v342_v28 = vadd.f32 %v341_v20, %v340_v16  ;;  %v375_v29 = vadd.f32 %v374_v21, %v373_v17  ;;  %v295_v15 = vld [vmem:[#allocation2 + $0x1] sm:$0x1]  ;;  %v328_v16 = vld [vmem:[#allocation2 + $0x2] sm:$0x1]  ;;  %v361_v17 = vld [vmem:[#allocation2 + $0x3] sm:$0x1] }
  0x6e   : > { %v264_v30 = vsel %vm229_vm0, %v263_v22, 0.0  ;;  %v297_v31 = vsel %vm229_vm0, %v296_v23, 0.0  ;;  %v330_v32 = vsel %vm229_vm0, %v329_v24, 0.0  ;;  %v363_v33 = vsel %vm229_vm0, %v362_v25, 0.0 }
  0x6f   : > { %v277_v34 = vrot.slane %v276_v26, 2  ;;  %v310_v35 = vrot.slane %v309_v27, 2  ;;  %v343_v36 = vrot.slane %v342_v28, 2  ;;  %v376_v37 = vrot.slane %v375_v29, 2 }
  0x70   : > { %v265_v38 = vrot.slane %v264_v30, 4  ;;  %v298_v39 = vrot.slane %v297_v31, 4  ;;  %v331_v11 = vrot.slane %v330_v32, 4  ;;  %v364_v40 = vrot.slane %v363_v33, 4 }
  0x71   : > { %v278_v41 = vadd.f32 %v277_v34, %v276_v26  ;;  %v311_v42 = vadd.f32 %v310_v35, %v309_v27  ;;  %v344_v43 = vadd.f32 %v343_v36, %v342_v28  ;;  %v377_v44 = vadd.f32 %v376_v37, %v375_v29  ;;  %v405_v27 = vld [vmem:[#allocation4] sm:$0xf] }
  0x72   : > { %v266_v47 = vadd.f32 %v265_v38, %v264_v30  ;;  %v299_v48 = vadd.f32 %v298_v39, %v297_v31  ;;  %v332_v49 = vadd.f32 %v331_v11, %v330_v32  ;;  %v365_v50 = vadd.f32 %v364_v40, %v363_v33 }
  0x73   : > { %v279_v51 = vrot.slane %v278_v41, 1  ;;  %v312_v52 = vrot.slane %v311_v42, 1  ;;  %v345_v54 = vrot.slane %v344_v43, 1  ;;  %v378_v55 = vrot.slane %v377_v44, 1 }
  0x74   : > { %v267_v57 = vrot.slane %v266_v47, 2  ;;  %v300_v58 = vrot.slane %v299_v48, 2  ;;  %v333_v59 = vrot.slane %v332_v49, 2  ;;  %v366_v60 = vrot.slane %v365_v50, 2 }
  0x75   : > { %v280_v61 = vadd.f32 %v279_v51, %v278_v41  ;;  %v313_v62 = vadd.f32 %v312_v52, %v311_v42  ;;  %v346_v63 = vadd.f32 %v345_v54, %v344_v43  ;;  %v379_v0 = vadd.f32 %v378_v55, %v377_v44 }
  0x76   : > { %v268_v1 = vadd.f32 %v267_v57, %v266_v47  ;;  %v301_v2 = vadd.f32 %v300_v58, %v299_v48  ;;  %v334_v3 = vadd.f32 %v333_v59, %v332_v49  ;;  %v367_v4 = vadd.f32 %v366_v60, %v365_v50 }
  0x77   : > { %v281_v5 = vadd.f32 %v280_v61, %v273_v45  ;;  %v314_v6 = vadd.f32 %v313_v62, %v306_v46  ;;  %v347_v7 = vadd.f32 %v346_v63, %v339_v53  ;;  %v380_v8 = vadd.f32 %v379_v0, %v372_v56 }
  0x78   : > { %v269_v10 = vrot.slane %v268_v1, 1  ;;  %v302_v12 = vrot.slane %v301_v2, 1  ;;  %v335_v13 = vrot.slane %v334_v3, 1  ;;  %v368_v14 = vrot.slane %v367_v4, 1 }
  0x79   : > { %282 = vst [vmem:[#allocation3] sm:$0x1] %v281_v5  ;;  %315 = vst [vmem:[#allocation3 + $0x1] sm:$0x1] %v314_v6  ;;  %v406_v29 = vsel %vm397_vm5, %v405_v27, 0.0 }
  0x7a   : > { %348 = vst [vmem:[#allocation3 + $0x2] sm:$0x1] %v347_v7  ;;  %381 = vst [vmem:[#allocation3 + $0x3] sm:$0x1] %v380_v8  ;;  %v270_v18 = vadd.f32 %v269_v10, %v268_v1  ;;  %v303_v19 = vadd.f32 %v302_v12, %v301_v2  ;;  %v336_v20 = vadd.f32 %v335_v13, %v334_v3 }
  0x7b   : > { %v369_v21 = vadd.f32 %v368_v14, %v367_v4 }
  0x7c   : > { %v271_v22 = vadd.f32 %v270_v18, %v262_v9  ;;  %v304_v23 = vadd.f32 %v303_v19, %v295_v15  ;;  %v337_v24 = vadd.f32 %v336_v20, %v328_v16 }
  0x7d   : > { %v370_v25 = vadd.f32 %v369_v21, %v361_v17 }
  0x7e   : > { %272 = vst [vmem:[#allocation2] sm:$0x1] %v271_v22  ;;  %305 = vst [vmem:[#allocation2 + $0x1] sm:$0x1] %v304_v23 }
  0x7f   : > { %338 = vst [vmem:[#allocation2 + $0x2] sm:$0x1] %v337_v24  ;;  %371 = vst [vmem:[#allocation2 + $0x3] sm:$0x1] %v370_v25 }
  0x81   : > { %v401_v26 = vld [vmem:[#allocation3] sm:$0xf] }
  0x82   : > { %v402_v28 = vsel %vm397_vm5, %v401_v26, 0.0 }
  0x83   : > { %403 = vadd.xlane.f32.xlu0 %v402_v28 }
  0x86   : > { %v396_v30 = vld [vmem:[#allocation2] sm:$0xf] }
  0x87   : > { %407 = vadd.xlane.f32.xlu0 %v406_v29  ;;  %v398_v31 = vsel %vm397_vm5, %v396_v30, 0.0 }
  0x88   : > { %399 = vadd.xlane.f32.xlu1 %v398_v31 }
 0x10c   : > { %v404_v32 = vpop.xlane.xlu0 %403 }
 0x110   : > { %v408_v33 = vpop.xlane.xlu0 %407 }
 0x111   : > { %v411_v34 = vadd.f32 %v408_v33, %v404_v32  ;;  %v400_v36 = vpop.xlane.xlu1 %399 }
 0x112   : > { %v409_v37 = vmul.f32 2.0, %v400_v36 }
 0x113   : > { %v412_v35 = vadd.f32 1e-05, %v411_v34 }
 0x114   : > { %v410_v38 = vadd.f32 1e-05, %v409_v37 }
 0x115   : > { %605 = vrcp.f32 %v412_v35 }
 0x122   : > { %v606_v39 = vpop.eup %605 }
 0x123   : > { %v414_v11 = vmul.f32 %v606_v39, %v410_v38 }
 0x125   : > { %416 = vst.msk [vmem:[%s216_s18] sm:$0xf] %vm415_vm6, %v414_v11 }
 0x126 PF: > { %s18_s14 = sadd.s32 1, %s717_s14   ;;  %s912_s9 = smov %s701_s10 }
 0x127   : > { %p15_p9 = scmp.ge.s32.totalorder %s18_s14, 4   ;;  %s913_s10 = smov %s705_s11 }
 0x128   : > { %s914_s11 = smov %s788_s21  ;;  %s915_s12 = smov %s713_s13 }
 0x129   : > { %s916_s13 = smov %s918_s16  ;;  %17 = sbr.rel (!%p15_p9) target bundleno = 6 (0x6), region = 89 }
 0x12e   :  { %436 = vsyncpa [#allocation6], 1 }
 0x12f   :  { %438 = vsyncpa [#allocation6 + $0x1], 1 }
 0x130   :  { %439 = vsyncpa [#allocation8], 1 }
 0x131   :  { %441 = vsyncpa [#allocation8 + $0x1], 1 }

</bundles_post_ra>
